<compile_context>
chip_gen: v5e
topology: v5e:2x2
jax: 0.10.0
libtpu: 0.0.40
codegen_flags: <defaults>
</compile_context>

<pallas_src>
import functools
import math

import jax
import jax.numpy as jnp
from jax.experimental import pallas as pl
from jax.experimental.pallas import tpu as pltpu


def _make_pe_table(d_model: int, max_len: int = 5000) -> jnp.ndarray:
    """Deterministic sinusoidal PE table, identical math to the PyTorch __init__.

    Note: like the common PyTorch implementation, this assumes an even d_model.
    """
    position = jnp.arange(max_len, dtype=jnp.float32)[:, None]              # (max_len, 1)
    div_term = jnp.exp(
        jnp.arange(0, d_model, 2, dtype=jnp.float32) * -(math.log(10000.0) / d_model)
    )                                                                        # (d_model/2,)
    pe = jnp.zeros((max_len, d_model), dtype=jnp.float32)
    pe = pe.at[:, 0::2].set(jnp.sin(position * div_term))
    pe = pe.at[:, 1::2].set(jnp.cos(position * div_term))
    return pe


def _default_target_bytes() -> int:
    """Per-block byte target.  Double-buffered in+out+PE is ~4x this, so 2 MiB fits
    v5e's 16 MiB scoped default and 4 MiB fits v6e/v7x's 32 MiB default."""
    try:
        kind = jax.devices()[0].device_kind.lower()
    except Exception:  # pragma: no cover - defensive; never fail tile selection
        kind = ""
    if ("v6" in kind) or ("v7" in kind):
        return 4 * 1024 * 1024
    return 2 * 1024 * 1024


def _choose_tiles(B: int, L: int, itemsize: int, target_bytes: int):
    """Pick (TB, TL) block dims for the flattened (B, L) layout.

    TB: multiple of the dtype's sublane quantum dividing B (or full B).
    TL: multiple of 128 dividing L, grown toward ~target_bytes per block.
    If TL hits the full feature extent, TB keeps growing (doubling, still a
    divisor of B) so small-feature / large-batch shapes still get big blocks.
    """
    # Sublane packing quantum: f32 -> 8, bf16 -> 16, int8/fp8 -> 32.
    sub_q = max(8, 32 // max(itemsize, 1))
    TB = sub_q if (B % sub_q == 0) else B            # full-extent block is always legal

    TL = 128  # wrapper guarantees L % 128 == 0 (padding)
    while (L % (TL * 2) == 0) and (TB * (TL * 2) * itemsize <= target_bytes):
        TL *= 2

    if TL == L:
        # Feature axis exhausted; grow the batch block toward the target instead.
        while (B % (TB * 2) == 0) and ((TB * 2) * TL * itemsize <= target_bytes):
            TB *= 2
    return TB, TL


def _pe_dropout_kernel(seed_ref, x_ref, pe_ref, o_ref, *,
                       p: float, training: bool, tb: int, tl: int, l_total: int):
    # x_ref: (TB, TL) tile of the flattened (B, L) input.
    # pe_ref: (1, TL) tile of the flattened PE row (sublane broadcast over batch rows).
    y = x_ref[...] + pe_ref[...]            # stays in x.dtype, no f32 round-trip

    if training and p > 0.0:
        # Inverted dropout with a counter-based hash PRNG on the global element
        # index -> mask is independent of the tiling and reproducible everywhere.
        li = pl.program_id(0)               # feature-block index (outer grid axis)
        bi = pl.program_id(1)               # batch-block index  (inner grid axis)

        # Hoist the row*l_total multiply onto a (TB, 1) vector (cheap), then
        # broadcast-add: saves one full-tile 32-bit integer multiply per step.
        row_base = (jax.lax.broadcasted_iota(jnp.int32, (tb, 1), 0) + bi * tb) * l_total
        cols = jax.lax.broadcasted_iota(jnp.int32, (tb, tl), 1) + li * tl
        # int32 arithmetic wraps mod 2^32 for tensors with >= 2^31 elements; benign
        # here since gidx is only a hash counter (still unique mod 2^32).
        gidx = (row_base + cols).astype(jnp.uint32)

        seed = seed_ref[0].astype(jnp.uint32) * jnp.uint32(0x9E3779B9)
        h = gidx ^ seed
        h = (h ^ (h >> 16)) * jnp.uint32(0x7FEB352D)   # splitmix32-style mixer
        h = (h ^ (h >> 15)) * jnp.uint32(0x846CA68B)
        h = h ^ (h >> 16)

        # Keep with probability (1 - p): raw uint32 threshold compare, no
        # int->float convert / shift / scale.
        thresh = jnp.uint32(min(int(round(p * 4294967296.0)), 4294967295))
        keep = h >= thresh
        scale = jnp.asarray(1.0 / (1.0 - p), dtype=y.dtype)
        y = jnp.where(keep, y * scale, jnp.zeros_like(y))

    o_ref[...] = y.astype(o_ref.dtype)


def positional_encoding_forward(x, pe_table, *, p: float = 0.1,
                                training: bool = False, seed: int = 0,
                                block_target_bytes=None):
    """Equivalent of PositionalEncoding.forward(x).  x: (B, S, D)."""
    B, S, D = x.shape
    assert pe_table.shape[0] >= S and pe_table.shape[1] == D
    if training:
        # p == 1.0 would make the inverted-dropout scale 1/(1-p) infinite.
        assert 0.0 <= p < 1.0, "dropout p must be in [0, 1) for the Pallas kernel"
    L = S * D

    # Lane-dense layout: (B, S*D) with PE as a single broadcastable row (1, S*D).
    x_flat = x.reshape(B, L)
    pe_flat = pe_table[:S, :].astype(x.dtype).reshape(1, L)

    # Harden odd d_model / odd S*D: pad the feature axis to a multiple of 128 so
    # every store is an unmasked full-lane vst and TL never becomes a huge
    # full-extent block.
    L_pad = ((L + 127) // 128) * 128
    if L_pad != L:
        x_flat = jnp.pad(x_flat, ((0, 0), (0, L_pad - L)))
        pe_flat = jnp.pad(pe_flat, ((0, 0), (0, L_pad - L)))

    itemsize = jnp.dtype(x.dtype).itemsize
    target = _default_target_bytes() if block_target_bytes is None else int(block_target_bytes)
    TB, TL = _choose_tiles(B, L_pad, itemsize, target)

    # Feature blocks OUTER, batch blocks INNER: the PE block index (0, li) is
    # unchanged across consecutive (inner) steps, so Pallas skips the PE re-DMA.
    grid = (L_pad // TL, B // TB)

    seed_arr = jnp.array([seed], dtype=jnp.int32)   # scalar-prefetch seed (SMEM)

    kernel = functools.partial(_pe_dropout_kernel, p=float(p), training=bool(training),
                               tb=TB, tl=TL, l_total=L_pad)
    out_flat = pl.pallas_call(
        kernel,
        out_shape=jax.ShapeDtypeStruct((B, L_pad), x.dtype),
        grid_spec=pltpu.PrefetchScalarGridSpec(
            num_scalar_prefetch=1,
            grid=grid,
            in_specs=[
                pl.BlockSpec((TB, TL), lambda li, bi, seed: (bi, li)),   # x tile
                pl.BlockSpec((1, TL), lambda li, bi, seed: (0, li)),     # PE tile (batch-bcast)
            ],
            out_specs=pl.BlockSpec((TB, TL), lambda li, bi, seed: (bi, li)),
        ),
        compiler_params=pltpu.CompilerParams(
            dimension_semantics=("parallel", "parallel")),
    )(seed_arr, x_flat, pe_flat)

    if L_pad != L:
        out_flat = out_flat[:, :L]
    return out_flat.reshape(B, S, D)


if __name__ == "__main__":
    dropout_p = 0.1
    key = jax.random.PRNGKey(0)
    pe_table_big = _make_pe_table(128, max_len=5000)

    # --- Case 1: module-sized shapes (batch=2, seq=8, d_model=32), eval + train ---
    B, S, D = 2, 8, 32
    pe_table = _make_pe_table(D, max_len=5000)
    k1, k2, k3 = jax.random.split(key, 3)
    x = jax.random.normal(k1, (B, S, D), dtype=jnp.float32)
    ref = x + pe_table[:S, :][None, :, :]

    out_eval = positional_encoding_forward(x, pe_table, p=dropout_p, training=False)
    out_eval = jax.block_until_ready(out_eval)
    assert jnp.allclose(out_eval, ref, atol=1e-6), "eval-mode mismatch"

    # Training-mode forward exercises the in-kernel dropout path.
    # TODO(synk): dropout mask uses an in-kernel counter-hash PRNG, so it cannot
    # bit-match torch's RNG stream (same keep-probability semantics though).
    out_train = positional_encoding_forward(x, pe_table, p=dropout_p,
                                            training=True, seed=1234)
    out_train = jax.block_until_ready(out_train)
    scale = 1.0 / (1.0 - dropout_p)
    kept = out_train != 0
    assert jnp.allclose(jnp.where(kept, out_train, 0.0),
                        jnp.where(kept, ref * scale, 0.0), atol=1e-5), \
        "training-mode kept values mismatch"

    # --- Case 2: multi-block grid (exercises the swapped grid + PE broadcast tile) ---
    B2, S2, D2 = 16, 64, 128
    x2 = jax.random.normal(k2, (B2, S2, D2), dtype=jnp.float32)
    ref2 = x2 + pe_table_big[:S2, :][None, :, :]
    out2 = positional_encoding_forward(x2, pe_table_big, p=dropout_p, training=False,
                                       block_target_bytes=64 * 1024)  # force a 4x2 grid
    out2 = jax.block_until_ready(out2)
    assert jnp.allclose(out2, ref2, atol=1e-6), "multi-block eval mismatch"

    # --- Case 3: odd feature size (S*D % 128 != 0) exercises the padding path ---
    B3, S3, D3 = 2, 8, 20
    pe_table_odd = _make_pe_table(D3, max_len=5000)
    x3 = jax.random.normal(k3, (B3, S3, D3), dtype=jnp.float32)
    ref3 = x3 + pe_table_odd[:S3, :][None, :, :]
    out3 = positional_encoding_forward(x3, pe_table_odd, p=dropout_p, training=False)
    out3 = jax.block_until_ready(out3)
    assert jnp.allclose(out3, ref3, atol=1e-6), "odd-feature eval mismatch"

    print("KERNEL_OK")
</pallas_src>

<mosaic_0001>
module attributes {stable_mosaic.version = 11 : i64} {
  func.func @_pe_dropout_kernel(%arg0: i32, %arg1: i32, %arg2: memref<1xi32, #tpu.memory_space<smem>>, %arg3: memref<2x256xf32, #tpu.memory_space<vmem>>, %arg4: memref<1x256xf32, #tpu.memory_space<vmem>>, %arg5: memref<2x256xf32, #tpu.memory_space<vmem>>) attributes {dimension_semantics = [#tpu.dimension_semantics<parallel>, #tpu.dimension_semantics<parallel>], iteration_bounds = array<i64: 1, 1>, scalar_prefetch = 1 : i64, scratch_operands = 0 : i64, tpu.core_type = #tpu.core_type<tc>, window_params = [{transform_indices = @transform_0, window_bounds = array<i64: 2, 256>}, {transform_indices = @transform_1, window_bounds = array<i64: 1, 256>}, {transform_indices = @transform_2, window_bounds = array<i64: 2, 256>}]} {
    %c0 = arith.constant 0 : index
    %c0_0 = arith.constant 0 : index
    %0 = vector.load %arg3[%c0, %c0_0] : memref<2x256xf32, #tpu.memory_space<vmem>>, vector<2x256xf32>
    %c0_1 = arith.constant 0 : index
    %c0_2 = arith.constant 0 : index
    %1 = vector.load %arg4[%c0_1, %c0_2] : memref<1x256xf32, #tpu.memory_space<vmem>>, vector<1x256xf32>
    %2 = vector.broadcast %1 : vector<1x256xf32> to vector<2x256xf32>
    %3 = arith.addf %0, %2 : vector<2x256xf32>
    %c0_3 = arith.constant 0 : index
    %c0_4 = arith.constant 0 : index
    %4 = vector.load %arg5[%c0_3, %c0_4] : memref<2x256xf32, #tpu.memory_space<vmem>>, vector<2x256xf32>
    tpu.vector_store %arg5[%c0_3, %c0_4], %3 {strides = array<i32>} : memref<2x256xf32, #tpu.memory_space<vmem>>, vector<2x256xf32>,
    return
  }
  func.func @transform_0(%arg0: i32, %arg1: i32, %arg2: memref<1xi32, #tpu.memory_space<smem>>) -> (i32, i32) {
    %c0_i32 = arith.constant 0 : i32
    return %arg1, %arg0 : i32, i32
  }
  func.func @transform_1(%arg0: i32, %arg1: i32, %arg2: memref<1xi32, #tpu.memory_space<smem>>) -> (i32, i32) {
    %c0_i32 = arith.constant 0 : i32
    %c0_i32_0 = arith.constant 0 : i32
    return %c0_i32, %arg0 : i32, i32
  }
  func.func @transform_2(%arg0: i32, %arg1: i32, %arg2: memref<1xi32, #tpu.memory_space<smem>>) -> (i32, i32) {
    %c0_i32 = arith.constant 0 : i32
    return %arg1, %arg0 : i32, i32
  }
}

</mosaic_0001>

<bundles_post_ra>
// kernel: tpu_custom_call.1
= control target key start
LH: loop header
LB: loop body
LE: loop exit
PB: predicated region body
PF: predicated region fallthrough
CT: control target
= control target key end

     0   :  { %9 = vsyncpa [#allocation5], 0  ;;  %s141_s0 = inlined_call_operand.<no memory space> [shape: s32[1], index: 0, kind: input, shape index: {}]   ;;  %s142_s1 = inlined_call_operand.hbm [shape: f32[2,256], index: 1, kind: input, shape index: {}]   ;;  %s143_s2 = inlined_call_operand.vmem [shape: f32[1,256], index: 2, kind: input, shape index: {}]   ;;  %s144_s3 = inlined_call_operand.hbm [shape: f32[2,256], index: 3, kind: output, shape index: {}]  }
   0x1   :  { %10 = vsyncpa [#allocation6], 0  ;;  %s16_s14 = sshll.u32 %s142_s1, 4  ;;  %s110_s15 = smov [#allocation4]   ;;  %s17_s14 = int_to_ptr.hbm [resolvable:$true] %s16_s14 }
   0x2   :  { %s18_s16 = sshll.u32 %s110_s15, 4  ;;  %s19_s16 = int_to_ptr.vmem [resolvable:$true] %s18_s16 }
   0x3   :  { %21 = dma.hbm_to_vmem [thread:$0]  %s17_s14, 64, %s19_s16, [#allocation5]  }
   0x4   :  { %106 = dma.done.wait [#allocation5], 64  }
   0x5   :  { %107 = vsyncadd [#allocation5], 4294967232  ;;  %v29_v0 = vld [vmem:[%s143_s2] sm:$0x3]  ;;  %vm34_vm0 = vcmask 1041408   ;;  %s111_s18 = smov [#allocation7]  }
   0x6   :  { %v31_v1 = vperm.slane %v29_v0, 0  ;;  %v32_v2 = vperm.slane %v29_v0, 1  ;;  %v28_v3 = vld [vmem:[#allocation4] sm:$0xf]  ;;  %s44_s19 = sshll.u32 %s111_s18, 4  ;;  %s46_s21 = sshll.u32 %s144_s3, 4  ;;  %s45_s19 = int_to_ptr.vmem [resolvable:$true] %s44_s19  ;;  %s47_s21 = int_to_ptr.hbm [resolvable:$true] %s46_s21 }
   0x8   :  { %v33_v4 = vrot.slane %v32_v2, 6 }
   0xa   :  { %v35_v5 = vsel %vm34_vm0, %v31_v1, %v33_v4 }
   0xb   :  { %v37_v6 = vadd.f32 %v35_v5, %v28_v3 }
   0xd   :  { %38 = vst [vmem:[#allocation7] sm:$0xf] %v37_v6 }
   0xe   :  { %49 = dma.vmem_to_hbm [thread:$0]  %s45_s19, 64, %s47_s21, [#allocation6]  }
   0xf   :  { %108 = dma.done.wait [#allocation6], 64  }
  0x10   :  { %109 = vsyncadd [#allocation6], 4294967232 }
  0x11   :  { %54 = vsyncpa [#allocation5], 1 }
  0x12   :  { %55 = vsyncpa [#allocation6], 1 }

</bundles_post_ra>
